<compile_context>
chip_gen: v6e
topology: v6e:2x2x1
jax: 0.10.0
libtpu: 0.0.40
codegen_flags: <defaults>
</compile_context>

<pallas_src>
import functools

import jax
import jax.numpy as jnp
from jax.experimental import pallas as pl
from jax.experimental.pallas import tpu as pltpu

# ----------------------- model configuration (cfg.MODEL.*) -----------------------
NUM_NODES = 16          # cfg.MODEL.NUM_NODES
RNN_UNITS = 32          # cfg.MODEL.RNN_UNITS
INPUT_DIM = 2           # cfg.MODEL.INPUT_DIM
MAX_DIFFUSION_STEP = 2  # cfg.MODEL.MAX_DIFFUSION_STEP
NUM_RNN_LAYERS = 1      # cfg.MODEL.NUM_RNN_LAYERS (EncoderModel builds 1 DCGRU cell)
FILTER_TYPE = "dual_random_walk"   # cfg.MODEL.FILTER_TYPE
NUM_SUPPORTS = 2        # dual_random_walk -> 2 supports
NUM_MATRICES = NUM_SUPPORTS * MAX_DIFFUSION_STEP + 1
D_TOTAL = INPUT_DIM + RNN_UNITS          # concat([inputs, state]) feature size
HIDDEN_STATE_SIZE = NUM_NODES * RNN_UNITS
BATCH = 2


# ------------------------------- Pallas kernel -----------------------------------
def _dcgru_cell_kernel(inp_ref, hx_ref, p_ref, wru_ref, bru_ref, wc_ref, bc_ref,
                       out_ref, *, bn):
    """Whole batch block per kernel step; batch stacked along sublanes (rows).

    inp_ref : (bn, INPUT_DIM)                    bn = batch_block * NUM_NODES
    hx_ref  : (bn, RNN_UNITS)
    p_ref   : (NUM_MATRICES*bn, bn)   precomputed T_m(S), block-diagonal over batch
    wru_ref : (NUM_MATRICES*D_TOTAL, 2U)         bru_ref: (1, 2U)
    wc_ref  : (NUM_MATRICES*D_TOTAL, U)          bc_ref : (1, U)
    out_ref : (bn, RNN_UNITS)
    """
    inp = inp_ref[...]                       # (bn, INPUT_DIM)
    hx = hx_ref[...]                         # (bn, U)
    p = p_ref[...]                           # (M*bn, bn)

    def gconv(x_cat, w, bias):
        # Diffusion for all M matrices and the whole batch in ONE matmul (the serial
        # Chebyshev recurrence was folded into `p` outside the kernel).
        terms = jnp.dot(p, x_cat, preferred_element_type=jnp.float32)   # (M*bn, D)
        # Fused contraction: concat the M terms along lanes and hit the MXU once
        # with a (bn, M*D) @ (M*D, out) matmul instead of M matmuls + M-1 adds.
        wide = jnp.concatenate(
            [terms[m * bn:(m + 1) * bn, :] for m in range(NUM_MATRICES)],
            axis=-1)                                                     # (bn, M*D)
        return jnp.dot(wide, w, preferred_element_type=jnp.float32) + bias

    # r/u gates (bias_start = 1.0 folded into bru).
    x_cat = jnp.concatenate([inp, hx], axis=-1)                          # (bn, D)
    value = jax.nn.sigmoid(gconv(x_cat, wru_ref[...], bru_ref[...]))     # (bn, 2U)
    r = value[:, :RNN_UNITS]
    u = value[:, RNN_UNITS:]

    # Candidate state.  The diffusion is a single matmul now, so re-diffusing the
    # tiny input columns costs nothing vs. caching them from the first gconv.
    c = jnp.tanh(gconv(jnp.concatenate([inp, r * hx], axis=-1),
                       wc_ref[...], bc_ref[...]))                        # (bn, U)

    out_ref[...] = (u * hx + (1.0 - u) * c).astype(out_ref.dtype)


def dcgru_cell_pallas(inputs, hx, cheb, w_ru_k, b_ru_k, w_c_k, b_c_k):
    """inputs: (B, N*INPUT_DIM), hx: (B, N*U)  ->  new hidden (B, N*U)."""
    B = inputs.shape[0]
    bn = B * NUM_NODES                       # whole (tiny) batch in one kernel step
    inp2 = inputs.reshape(bn, INPUT_DIM).astype(jnp.float32)   # free reshapes
    hx2 = hx.reshape(bn, RNN_UNITS).astype(jnp.float32)

    # Block-diagonal (over the batch) Chebyshev matrices, stacked over m:
    #   pbig[m*bn + b*N + n', b*N + n] = T_m[n', n]
    eye_b = jnp.eye(B, dtype=jnp.float32)
    pbig = jnp.einsum("ij,mkl->mikjl", eye_b, cheb).reshape(NUM_MATRICES * bn, bn)

    kernel = functools.partial(_dcgru_cell_kernel, bn=bn)
    out = pl.pallas_call(
        kernel,
        out_shape=jax.ShapeDtypeStruct((bn, RNN_UNITS), jnp.float32),
        grid=(1,),   # single batch block (becomes (num_batch_blocks,) for large B)
        in_specs=[
            pl.BlockSpec((bn, INPUT_DIM), lambda i: (i, 0)),
            pl.BlockSpec((bn, RNN_UNITS), lambda i: (i, 0)),
            # grid-invariant operands (constant index maps); total working set is
            # < 100 KB and the grid has one step, so no multi-buffer tuning needed.
            pl.BlockSpec((NUM_MATRICES * bn, bn), lambda i: (0, 0)),
            pl.BlockSpec((NUM_MATRICES * D_TOTAL, 2 * RNN_UNITS), lambda i: (0, 0)),
            pl.BlockSpec((1, 2 * RNN_UNITS), lambda i: (0, 0)),
            pl.BlockSpec((NUM_MATRICES * D_TOTAL, RNN_UNITS), lambda i: (0, 0)),
            pl.BlockSpec((1, RNN_UNITS), lambda i: (0, 0)),
        ],
        out_specs=pl.BlockSpec((bn, RNN_UNITS), lambda i: (i, 0)),
        compiler_params=pltpu.CompilerParams(dimension_semantics=("parallel",)),
    )(inp2, hx2, pbig, w_ru_k, b_ru_k, w_c_k, b_c_k)
    # (B*N, U) -> (B, N*U) is a contiguous (free) reshape; identical HBM bytes.
    return out.reshape(B, HIDDEN_STATE_SIZE)


# ---------------------------- EncoderModel wrapper --------------------------------
def encoder_model_forward(inputs, params, hidden_state=None):
    """EncoderModel.forward.

    inputs: (B, num_nodes*input_dim)
    hidden_state: (num_layers, B, hidden_state_size) or None (-> zeros)
    returns: output (B, hidden_state_size), hidden (num_layers, B, hidden_state_size)
    """
    B = inputs.shape[0]
    if hidden_state is None:
        hidden_state = jnp.zeros((NUM_RNN_LAYERS, B, HIDDEN_STATE_SIZE), jnp.float32)
    cheb, layer_params = params
    hidden_states = []
    output = inputs
    for layer_num, lp in enumerate(layer_params):     # a single DCGRU layer
        next_h = dcgru_cell_pallas(output, hidden_state[layer_num], cheb, *lp)
        hidden_states.append(next_h)
        output = next_h
    return output, jnp.stack(hidden_states)


# ------------------------ pure-JAX reference (mirrors torch) ----------------------
def _gconv_ref(inputs, state, supports_list, W, b, output_size):
    batch_size = inputs.shape[0]
    x_in = inputs.reshape(batch_size, NUM_NODES, -1)
    x_st = state.reshape(batch_size, NUM_NODES, -1)
    x = jnp.concatenate([x_in, x_st], axis=2)
    input_size = x.shape[2]
    x0 = x.transpose(1, 2, 0).reshape(NUM_NODES, input_size * batch_size)
    xs = [x0]
    for S in supports_list:
        x1 = S @ x0
        xs.append(x1)
        xkm2, xkm1 = x0, x1
        for _ in range(2, MAX_DIFFUSION_STEP + 1):
            x2 = 2.0 * (S @ xkm1) - xkm2
            xs.append(x2)
            xkm2, xkm1 = xkm1, x2
    num_matrices = len(xs)
    x = jnp.stack(xs, axis=0)
    x = x.reshape(num_matrices, NUM_NODES, input_size, batch_size)
    x = x.transpose(3, 1, 2, 0).reshape(batch_size * NUM_NODES,
                                        input_size * num_matrices)
    x = x @ W + b
    return x.reshape(batch_size, NUM_NODES * output_size)


def _dcgru_cell_ref(inputs, hx, supports_list, w_ru, b_ru, w_c, b_c):
    output_size = 2 * RNN_UNITS
    value = jax.nn.sigmoid(_gconv_ref(inputs, hx, supports_list, w_ru, b_ru,
                                      output_size))
    value = value.reshape(-1, NUM_NODES, output_size)
    r = value[..., :RNN_UNITS].reshape(-1, HIDDEN_STATE_SIZE)
    u = value[..., RNN_UNITS:].reshape(-1, HIDDEN_STATE_SIZE)
    c = jnp.tanh(_gconv_ref(inputs, r * hx, supports_list, w_c, b_c, RNN_UNITS))
    return u * hx + (1.0 - u) * c


def encoder_model_ref(inputs, supports_list, w_ru, b_ru, w_c, b_c,
                      hidden_state=None):
    B = inputs.shape[0]
    if hidden_state is None:
        hidden_state = jnp.zeros((NUM_RNN_LAYERS, B, HIDDEN_STATE_SIZE), jnp.float32)
    hidden_states = []
    output = inputs
    for layer_num in range(1):
        next_h = _dcgru_cell_ref(output, hidden_state[layer_num], supports_list,
                                 w_ru, b_ru, w_c, b_c)
        hidden_states.append(next_h)
        output = next_h
    return output, jnp.stack(hidden_states)


# ------------------------------- parameter setup ----------------------------------
def _random_walk_matrix(adj):
    d = adj.sum(axis=1)
    d_inv = jnp.where(d > 0, 1.0 / d, 0.0)
    return d_inv[:, None] * adj


def build_supports(adj):
    # dual_random_walk: [rw(adj).T, rw(adj.T).T]
    return [_random_walk_matrix(adj).T, _random_walk_matrix(adj.T).T]


def build_chebyshev_stack(supports_list):
    """Fold the diffusion recurrence into explicit matrices:
    T_0 = I; per support S: T_1 = S, T_k = 2*S@T_{k-1} - T_{k-2}."""
    eye = jnp.eye(NUM_NODES, dtype=jnp.float32)
    mats = [eye]
    for s in supports_list:
        t0, t1 = eye, s
        mats.append(t1)
        for _ in range(2, MAX_DIFFUSION_STEP + 1):
            t2 = 2.0 * (s @ t1) - t0
            mats.append(t2)
            t0, t1 = t1, t2
    return jnp.stack(mats, axis=0)        # (NUM_MATRICES, N, N)


def build_params(key):
    k_adj, k_wru, k_wc = jax.random.split(key, 3)
    adj = jax.random.uniform(k_adj, (NUM_NODES, NUM_NODES), dtype=jnp.float32)
    adj = adj + jnp.eye(NUM_NODES, dtype=jnp.float32)  # self loops, strictly positive
    supports_list = build_supports(adj)
    cheb = build_chebyshev_stack(supports_list)        # one-time parameter prep

    # gconv weights, torch layout: (input_size * num_matrices, output_size),
    # row index = d * num_matrices + m.  biases: bias_start 1.0 (r/u) and 0.0 (c).
    w_ru = 0.1 * jax.random.normal(k_wru, (D_TOTAL * NUM_MATRICES, 2 * RNN_UNITS),
                                   dtype=jnp.float32)
    w_c = 0.1 * jax.random.normal(k_wc, (D_TOTAL * NUM_MATRICES, RNN_UNITS),
                                  dtype=jnp.float32)
    b_ru = jnp.full((2 * RNN_UNITS,), 1.0, dtype=jnp.float32)
    b_c = jnp.zeros((RNN_UNITS,), dtype=jnp.float32)

    # kernel layout: torch row index d*M + m  ->  m*D_TOTAL + d (flat 2-D so the
    # whole per-matrix accumulation is one fused matmul in the kernel)
    w_ru_k = (w_ru.reshape(D_TOTAL, NUM_MATRICES, 2 * RNN_UNITS)
              .transpose(1, 0, 2).reshape(NUM_MATRICES * D_TOTAL, 2 * RNN_UNITS))
    w_c_k = (w_c.reshape(D_TOTAL, NUM_MATRICES, RNN_UNITS)
             .transpose(1, 0, 2).reshape(NUM_MATRICES * D_TOTAL, RNN_UNITS))
    b_ru_k = b_ru.reshape(1, 2 * RNN_UNITS)
    b_c_k = b_c.reshape(1, RNN_UNITS)

    kernel_params = (cheb, [(w_ru_k, b_ru_k, w_c_k, b_c_k)])
    ref_params = (supports_list, w_ru, b_ru, w_c, b_c)
    return kernel_params, ref_params


# -------------------------------------- main ---------------------------------------
if __name__ == "__main__":
    key = jax.random.PRNGKey(0)
    k_par, k_inp = jax.random.split(key)
    kernel_params, ref_params = build_params(k_par)

    # encoder step input: (batch, num_nodes * input_dim); hidden_state=None -> zeros
    inputs = jax.random.normal(k_inp, (BATCH, NUM_NODES * INPUT_DIM),
                               dtype=jnp.float32)

    out, hidden = encoder_model_forward(inputs, kernel_params, hidden_state=None)
    out = jax.block_until_ready(out)
    hidden = jax.block_until_ready(hidden)

    assert out.shape == (BATCH, HIDDEN_STATE_SIZE)
    assert hidden.shape == (NUM_RNN_LAYERS, BATCH, HIDDEN_STATE_SIZE)

    # sanity check vs. pure-JAX reference that mirrors the torch code literally
    supports_list, w_ru, b_ru, w_c, b_c = ref_params
    out_ref, hidden_ref = encoder_model_ref(inputs, supports_list, w_ru, b_ru,
                                            w_c, b_c, hidden_state=None)
    assert jnp.allclose(out, out_ref, atol=1e-4, rtol=1e-4), "output mismatch"
    assert jnp.allclose(hidden, hidden_ref, atol=1e-4, rtol=1e-4), "hidden mismatch"

    print("KERNEL_OK")
</pallas_src>

<mosaic_0001>
module attributes {stable_mosaic.version = 11 : i64} {
  func.func @_dcgru_cell_kernel(%arg0: i32, %arg1: memref<32x2xf32, #tpu.memory_space<vmem>>, %arg2: memref<32x32xf32, #tpu.memory_space<vmem>>, %arg3: memref<160x32xf32, #tpu.memory_space<vmem>>, %arg4: memref<170x64xf32, #tpu.memory_space<vmem>>, %arg5: memref<1x64xf32, #tpu.memory_space<vmem>>, %arg6: memref<170x32xf32, #tpu.memory_space<vmem>>, %arg7: memref<1x32xf32, #tpu.memory_space<vmem>>, %arg8: memref<32x32xf32, #tpu.memory_space<vmem>>) attributes {dimension_semantics = [#tpu.dimension_semantics<parallel>], iteration_bounds = array<i64: 1>, scalar_prefetch = 0 : i64, scratch_operands = 0 : i64, tpu.core_type = #tpu.core_type<tc>, window_params = [{transform_indices = @transform_0, window_bounds = array<i64: 32, 2>}, {transform_indices = @transform_1, window_bounds = array<i64: 32, 32>}, {pipeline_mode = #tpu.pipeline_mode<synchronous>, transform_indices = @transform_2, window_bounds = array<i64: 160, 32>}, {pipeline_mode = #tpu.pipeline_mode<synchronous>, transform_indices = @transform_3, window_bounds = array<i64: 170, 64>}, {pipeline_mode = #tpu.pipeline_mode<synchronous>, transform_indices = @transform_4, window_bounds = array<i64: 1, 64>}, {pipeline_mode = #tpu.pipeline_mode<synchronous>, transform_indices = @transform_5, window_bounds = array<i64: 170, 32>}, {pipeline_mode = #tpu.pipeline_mode<synchronous>, transform_indices = @transform_6, window_bounds = array<i64: 1, 32>}, {transform_indices = @transform_7, window_bounds = array<i64: 32, 32>}]} {
    %c0 = arith.constant 0 : index
    %c0_0 = arith.constant 0 : index
    %0 = vector.load %arg1[%c0, %c0_0] : memref<32x2xf32, #tpu.memory_space<vmem>>, vector<32x2xf32>
    %c0_1 = arith.constant 0 : index
    %c0_2 = arith.constant 0 : index
    %1 = vector.load %arg2[%c0_1, %c0_2] : memref<32x32xf32, #tpu.memory_space<vmem>>, vector<32x32xf32>
    %c0_3 = arith.constant 0 : index
    %c0_4 = arith.constant 0 : index
    %2 = vector.load %arg3[%c0_3, %c0_4] : memref<160x32xf32, #tpu.memory_space<vmem>>, vector<160x32xf32>
    %3 = tpu.concatenate %0, %1 in 1 : vector<32x2xf32>, vector<32x32xf32> -> vector<32x34xf32>
    %c0_5 = arith.constant 0 : index
    %c0_6 = arith.constant 0 : index
    %4 = vector.load %arg4[%c0_5, %c0_6] : memref<170x64xf32, #tpu.memory_space<vmem>>, vector<170x64xf32>
    %c0_7 = arith.constant 0 : index
    %c0_8 = arith.constant 0 : index
    %5 = vector.load %arg5[%c0_7, %c0_8] : memref<1x64xf32, #tpu.memory_space<vmem>>, vector<1x64xf32>
    %cst = arith.constant dense<0.000000e+00> : vector<160x34xf32>
    %6 = tpu.matmul %2, %3, %cst {dimension_numbers = #tpu.dot_dimension_numbers<[1], [0], [0], [1], [0, 0, 1, 1], [], []>} : vector<160x32xf32>, vector<32x34xf32>, vector<160x34xf32> -> vector<160x34xf32>
    %7 = vector.extract_strided_slice %6 {offsets = [0, 0], sizes = [32, 34], strides = [1, 1]} : vector<160x34xf32> to vector<32x34xf32>
    %8 = vector.extract_strided_slice %6 {offsets = [32, 0], sizes = [32, 34], strides = [1, 1]} : vector<160x34xf32> to vector<32x34xf32>
    %9 = vector.extract_strided_slice %6 {offsets = [64, 0], sizes = [32, 34], strides = [1, 1]} : vector<160x34xf32> to vector<32x34xf32>
    %10 = vector.extract_strided_slice %6 {offsets = [96, 0], sizes = [32, 34], strides = [1, 1]} : vector<160x34xf32> to vector<32x34xf32>
    %11 = vector.extract_strided_slice %6 {offsets = [128, 0], sizes = [32, 34], strides = [1, 1]} : vector<160x34xf32> to vector<32x34xf32>
    %12 = tpu.concatenate %7, %8, %9, %10, %11 in 1 : vector<32x34xf32>, vector<32x34xf32>, vector<32x34xf32>, vector<32x34xf32>, vector<32x34xf32> -> vector<32x170xf32>
    %cst_9 = arith.constant dense<0.000000e+00> : vector<32x64xf32>
    %13 = tpu.matmul %12, %4, %cst_9 {dimension_numbers = #tpu.dot_dimension_numbers<[1], [0], [0], [1], [0, 0, 1, 1], [], []>} : vector<32x170xf32>, vector<170x64xf32>, vector<32x64xf32> -> vector<32x64xf32>
    %14 = vector.broadcast %5 : vector<1x64xf32> to vector<32x64xf32>
    %15 = arith.addf %13, %14 : vector<32x64xf32>
    %16 = arith.negf %15 : vector<32x64xf32>
    %17 = math.exp %16 : vector<32x64xf32>
    %cst_10 = arith.constant 1.000000e+00 : f32
    %18 = vector.broadcast %cst_10 : f32 to vector<32x64xf32>
    %19 = arith.addf %18, %17 : vector<32x64xf32>
    %20 = arith.divf %18, %19 : vector<32x64xf32>
    %21 = vector.extract_strided_slice %20 {offsets = [0, 0], sizes = [32, 32], strides = [1, 1]} : vector<32x64xf32> to vector<32x32xf32>
    %22 = vector.extract_strided_slice %20 {offsets = [0, 32], sizes = [32, 32], strides = [1, 1]} : vector<32x64xf32> to vector<32x32xf32>
    %23 = arith.mulf %21, %1 : vector<32x32xf32>
    %24 = tpu.concatenate %0, %23 in 1 : vector<32x2xf32>, vector<32x32xf32> -> vector<32x34xf32>
    %c0_11 = arith.constant 0 : index
    %c0_12 = arith.constant 0 : index
    %25 = vector.load %arg6[%c0_11, %c0_12] : memref<170x32xf32, #tpu.memory_space<vmem>>, vector<170x32xf32>
    %c0_13 = arith.constant 0 : index
    %c0_14 = arith.constant 0 : index
    %26 = vector.load %arg7[%c0_13, %c0_14] : memref<1x32xf32, #tpu.memory_space<vmem>>, vector<1x32xf32>
    %cst_15 = arith.constant dense<0.000000e+00> : vector<160x34xf32>
    %27 = tpu.matmul %2, %24, %cst_15 {dimension_numbers = #tpu.dot_dimension_numbers<[1], [0], [0], [1], [0, 0, 1, 1], [], []>} : vector<160x32xf32>, vector<32x34xf32>, vector<160x34xf32> -> vector<160x34xf32>
    %28 = vector.extract_strided_slice %27 {offsets = [0, 0], sizes = [32, 34], strides = [1, 1]} : vector<160x34xf32> to vector<32x34xf32>
    %29 = vector.extract_strided_slice %27 {offsets = [32, 0], sizes = [32, 34], strides = [1, 1]} : vector<160x34xf32> to vector<32x34xf32>
    %30 = vector.extract_strided_slice %27 {offsets = [64, 0], sizes = [32, 34], strides = [1, 1]} : vector<160x34xf32> to vector<32x34xf32>
    %31 = vector.extract_strided_slice %27 {offsets = [96, 0], sizes = [32, 34], strides = [1, 1]} : vector<160x34xf32> to vector<32x34xf32>
    %32 = vector.extract_strided_slice %27 {offsets = [128, 0], sizes = [32, 34], strides = [1, 1]} : vector<160x34xf32> to vector<32x34xf32>
    %33 = tpu.concatenate %28, %29, %30, %31, %32 in 1 : vector<32x34xf32>, vector<32x34xf32>, vector<32x34xf32>, vector<32x34xf32>, vector<32x34xf32> -> vector<32x170xf32>
    %cst_16 = arith.constant dense<0.000000e+00> : vector<32x32xf32>
    %34 = tpu.matmul %33, %25, %cst_16 {dimension_numbers = #tpu.dot_dimension_numbers<[1], [0], [0], [1], [0, 0, 1, 1], [], []>} : vector<32x170xf32>, vector<170x32xf32>, vector<32x32xf32> -> vector<32x32xf32>
    %35 = vector.broadcast %26 : vector<1x32xf32> to vector<32x32xf32>
    %36 = arith.addf %34, %35 : vector<32x32xf32>
    %37 = math.tanh %36 : vector<32x32xf32>
    %38 = arith.mulf %22, %1 : vector<32x32xf32>
    %cst_17 = arith.constant 1.000000e+00 : f32
    %39 = vector.broadcast %cst_17 : f32 to vector<32x32xf32>
    %40 = arith.subf %39, %22 : vector<32x32xf32>
    %41 = arith.mulf %40, %37 : vector<32x32xf32>
    %42 = arith.addf %38, %41 : vector<32x32xf32>
    %c0_18 = arith.constant 0 : index
    %c0_19 = arith.constant 0 : index
    %43 = vector.load %arg8[%c0_18, %c0_19] : memref<32x32xf32, #tpu.memory_space<vmem>>, vector<32x32xf32>
    tpu.vector_store %arg8[%c0_18, %c0_19], %42 {strides = array<i32>} : memref<32x32xf32, #tpu.memory_space<vmem>>, vector<32x32xf32>,
    return
  }
  func.func @transform_0(%arg0: i32) -> (i32, i32) {
    %c0_i32 = arith.constant 0 : i32
    %c0_i32_0 = arith.constant 0 : i32
    return %arg0, %c0_i32 : i32, i32
  }
  func.func @transform_1(%arg0: i32) -> (i32, i32) {
    %c0_i32 = arith.constant 0 : i32
    %c0_i32_0 = arith.constant 0 : i32
    return %arg0, %c0_i32 : i32, i32
  }
  func.func @transform_2(%arg0: i32) -> (i32, i32) {
    %c0_i32 = arith.constant 0 : i32
    %c0_i32_0 = arith.constant 0 : i32
    %c0_i32_1 = arith.constant 0 : i32
    return %c0_i32, %c0_i32_0 : i32, i32
  }
  func.func @transform_3(%arg0: i32) -> (i32, i32) {
    %c0_i32 = arith.constant 0 : i32
    %c0_i32_0 = arith.constant 0 : i32
    %c0_i32_1 = arith.constant 0 : i32
    return %c0_i32, %c0_i32_0 : i32, i32
  }
  func.func @transform_4(%arg0: i32) -> (i32, i32) {
    %c0_i32 = arith.constant 0 : i32
    %c0_i32_0 = arith.constant 0 : i32
    %c0_i32_1 = arith.constant 0 : i32
    return %c0_i32, %c0_i32_0 : i32, i32
  }
  func.func @transform_5(%arg0: i32) -> (i32, i32) {
    %c0_i32 = arith.constant 0 : i32
    %c0_i32_0 = arith.constant 0 : i32
    %c0_i32_1 = arith.constant 0 : i32
    return %c0_i32, %c0_i32_0 : i32, i32
  }
  func.func @transform_6(%arg0: i32) -> (i32, i32) {
    %c0_i32 = arith.constant 0 : i32
    %c0_i32_0 = arith.constant 0 : i32
    %c0_i32_1 = arith.constant 0 : i32
    return %c0_i32, %c0_i32_0 : i32, i32
  }
  func.func @transform_7(%arg0: i32) -> (i32, i32) {
    %c0_i32 = arith.constant 0 : i32
    %c0_i32_0 = arith.constant 0 : i32
    return %arg0, %c0_i32 : i32, i32
  }
}

</mosaic_0001>

<bundles_post_ra>
// kernel: tpu_custom_call.1
= control target key start
LH: loop header
LB: loop body
LE: loop exit
PB: predicated region body
PF: predicated region fallthrough
CT: control target
= control target key end

     0   :  { %s1343_s28 = smov 2   ;;  %vm99_vm0 = vcmask 261120   ;;  %s1980_s0 = inlined_call_operand.vmem [shape: f32[32,2], index: 0, kind: input, shape index: {}]   ;;  %s1981_s1 = inlined_call_operand.vmem [shape: f32[32,32], index: 1, kind: input, shape index: {}]   ;;  %s1982_s2 = inlined_call_operand.vmem [shape: f32[160,32], index: 2, kind: input, shape index: {}]   ;;  %s1983_s3 = inlined_call_operand.vmem [shape: f32[170,64], index: 3, kind: input, shape index: {}]   ;;  %s1984_s4 = inlined_call_operand.vmem [shape: f32[1,64], index: 4, kind: input, shape index: {}]   ;;  %s1985_s5 = inlined_call_operand.vmem [shape: f32[170,32], index: 5, kind: input, shape index: {}]   ;;  %s1986_s6 = inlined_call_operand.vmem [shape: f32[1,32], index: 6, kind: input, shape index: {}]   ;;  %s1987_s7 = inlined_call_operand.hbm [shape: f32[32,32], index: 7, kind: output, shape index: {}]  }
   0x1   :  { %v1396_v0 = vld [vmem:[%s1981_s1 + $0x18] sm:$0xff]  ;;  %v1401_v1 = vld [vmem:[%s1981_s1 + $0x8] sm:$0xff]  ;;  %v1410_v2 = vld [vmem:[%s1981_s1 + $0x10] sm:$0xff] }
   0x2   :  { %65 = vrot.lane.b32.xlu0 %v1396_v0, %s1343_s28  ;;  %61 = vrot.lane.b32.xlu1 %v1401_v1, %s1343_s28  ;;  %v1415_v3 = vld [vmem:[%s1981_s1] sm:$0xff] }
   0x3   :  { %v1420_v4 = vld [vmem:[%s1982_s2] sm:$0xff] }
   0x4   :  { %1135 = vmatprep.mubr.msk.f32.mxu0 %vm99_vm0, %v1420_v4 }
   0x6   :  { %63 = vrot.lane.b32.xlu0 %v1410_v2, %s1343_s28  ;;  %59 = vrot.lane.b32.xlu1 %v1415_v3, %s1343_s28 }
   0x7   :  { %12 = vsyncpa [#allocation3], 0  ;;  %v1431_v5 = vld [vmem:[%s1980_s0 + $0x18] sm:$0xff]  ;;  %vm71_vm1 = vcmask 15360   ;;  %v1438_v9 = vld [vmem:[%s1980_s0 + $0x10] sm:$0xff]  ;;  %v1344_v37 = vmov 0.0  }
   0x8   :  { %v1443_v12 = vld [vmem:[%s1980_s0 + $0x8] sm:$0xff]  ;;  %v1448_v13 = vld [vmem:[%s1980_s0] sm:$0xff]  ;;  %v1464_v18 = vld [vmem:[%s1982_s2 + $0x10] sm:$0xff]  ;;  %432 = vmatprep.subr.mxu1 %v1344_v37  ;;  %vm428_vm2 = vcmask 1041408   ;;  %s1345_s17 = smov 34   ;;  %s1346_s25 = smov 68  }
   0x9   :  { %v1459_v17 = vld [vmem:[%s1982_s2 + $0x8] sm:$0xff]  ;;  %v1473_v19 = vld [vmem:[%s1982_s2 + $0x18] sm:$0xff]  ;;  %v1478_v20 = vld [vmem:[%s1982_s2 + $0x20] sm:$0xff]  ;;  %s1347_s29 = smov 102   ;;  %s1348_s30 = smov 8   ;;  %vm389_vm3 = vcmask 277504  }
   0xa   :  { %v1487_v21 = vld [vmem:[%s1982_s2 + $0x28] sm:$0xff]  ;;  %v1492_v22 = vld [vmem:[%s1982_s2 + $0x30] sm:$0xff]  ;;  %v1501_v23 = vld [vmem:[%s1982_s2 + $0x38] sm:$0xff]  ;;  %vm394_vm4 = vcmask 556032   ;;  %vm415_vm5 = vcmask 343040   ;;  %vm404_vm6 = vcmask 64512  }
   0xb   :  { %v1506_v24 = vld [vmem:[%s1982_s2 + $0x40] sm:$0xff]  ;;  %v1515_v25 = vld [vmem:[%s1982_s2 + $0x48] sm:$0xff]  ;;  %v1520_v26 = vld [vmem:[%s1982_s2 + $0x50] sm:$0xff]  ;;  %vm399_vm7 = vcmask 834560   ;;  %s1351_s24 = smov [#allocation2]  }
   0xc   :  { %v1529_v27 = vld [vmem:[%s1982_s2 + $0x58] sm:$0xff]  ;;  %v1534_v28 = vld [vmem:[%s1982_s2 + $0x60] sm:$0xff]  ;;  %v1543_v29 = vld [vmem:[%s1982_s2 + $0x68] sm:$0xff]  ;;  %s1012_s26 = sshll.u32 %s1351_s24, 4  ;;  %s1013_s26 = int_to_ptr.vmem [resolvable:$true] %s1012_s26 }
   0xd   :  { %v1548_v30 = vld [vmem:[%s1982_s2 + $0x70] sm:$0xff]  ;;  %v1557_v31 = vld [vmem:[%s1982_s2 + $0x78] sm:$0xff]  ;;  %v1562_v32 = vld [vmem:[%s1982_s2 + $0x80] sm:$0xff]  ;;  %s1321_s27 = scalar_lea.vmem %s1013_s26, 512  ;;  %p1326_p1 = scmp.lt.s32.totalorder %s1013_s26, %s1013_s26 }
   0xe   :  { %v1571_v33 = vld [vmem:[%s1982_s2 + $0x88] sm:$0xff]  ;;  %v1576_v34 = vld [vmem:[%s1982_s2 + $0x90] sm:$0xff]  ;;  %v1585_v35 = vld [vmem:[%s1982_s2 + $0x98] sm:$0xff]  ;;  %p1322_p0 = scmp.ne.s32.totalorder %s1013_s26, %s1321_s27  ;;  %p1327_p2 = scmp.lt.s32.totalorder %s1321_s27, %s1321_s27 }
   0xf   :  { %v91_v36 = vld [vmem:[%s1983_s3 + $0x78] sm:$0xff]  ;;  %v90_v38 = vld [vmem:[%s1983_s3 + $0x70] sm:$0xff]  ;;  %v89_v39 = vld [vmem:[%s1983_s3 + $0x68] sm:$0xff] }
  0x10   :  { %433 = vmatpush1.msra.mxu1 %v91_v36  ;;  %v88_v40 = vld [vmem:[%s1983_s3 + $0x60] sm:$0xff]  ;;  %v87_v41 = vld [vmem:[%s1983_s3 + $0x58] sm:$0xff]  ;;  %v86_v42 = vld [vmem:[%s1983_s3 + $0x50] sm:$0xff]  ;;  %p1328_p3 = por %p1327_p2, %p1326_p1 }
  0x11   :  { %434 = vmatprep.subr.mxu1 %v1344_v37  ;;  %v85_v43 = vld [vmem:[%s1983_s3 + $0x48] sm:$0xff]  ;;  %v84_v44 = vld [vmem:[%s1983_s3 + $0x40] sm:$0xff]  ;;  %v83_v45 = vld [vmem:[%s1983_s3 + $0x38] sm:$0xff] }
  0x12   :  { %435 = vmatpush1.msra.mxu1 %v90_v38  ;;  %v82_v47 = vld [vmem:[%s1983_s3 + $0x30] sm:$0xff]  ;;  %v81_v48 = vld [vmem:[%s1983_s3 + $0x28] sm:$0xff]  ;;  %v80_v50 = vld [vmem:[%s1983_s3 + $0x20] sm:$0xff]  ;;  %p1329_p4 = pnand %p1328_p3, %p1322_p0 }
  0x13   :  { %436 = vmatprep.subr.mxu1 %v1344_v37  ;;  %v79_v52 = vld [vmem:[%s1983_s3 + $0x18] sm:$0xff]  ;;  %v78_v55 = vld [vmem:[%s1983_s3 + $0x10] sm:$0xff]  ;;  %v77_v56 = vld [vmem:[%s1983_s3 + $0x8] sm:$0xff] }
  0x14   :  { %437 = vmatpush1.msra.mxu1 %v89_v39  ;;  %v76_v59 = vld [vmem:[%s1983_s3] sm:$0xff]  ;;  %v97_v61 = vld [vmem:[%s1983_s3 + $0xa8] sm:$0x3] }
  0x15   :  { %438 = vmatprep.subr.mxu1 %v1344_v37  ;;  %v96_v63 = vld [vmem:[%s1983_s3 + $0xa0] sm:$0xff] }
  0x16   :  { %439 = vmatpush1.msra.mxu1 %v88_v40 }
  0x17   :  { %440 = vmatprep.subr.mxu1 %v1344_v37 }
  0x18   :  { %441 = vmatpush1.msra.mxu1 %v87_v41 }
  0x19   :  { %442 = vmatprep.subr.mxu1 %v1344_v37 }
  0x1a   :  { %443 = vmatpush1.msra.mxu1 %v86_v42 }
  0x1b   :  { %444 = vmatprep.subr.mxu1 %v1344_v37 }
  0x1c   :  { %445 = vmatpush1.msra.mxu1 %v85_v43 }
  0x1d   :  { %446 = vmatprep.subr.mxu1 %v1344_v37 }
  0x1e   :  { %447 = vmatpush1.msra.mxu1 %v84_v44 }
  0x1f   :  { %448 = vmatprep.subr.mxu1 %v1344_v37 }
  0x20   :  { %449 = vmatpush1.msra.mxu1 %v83_v45 }
  0x21   :  { %450 = vmatprep.subr.mxu1 %v1344_v37 }
  0x22   :  { %451 = vmatpush1.msra.mxu1 %v82_v47 }
  0x23   :  { %452 = vmatprep.subr.mxu1 %v1344_v37 }
  0x24   :  { %453 = vmatpush1.msra.mxu1 %v81_v48 }
  0x25   :  { %454 = vmatprep.subr.mxu1 %v1344_v37 }
  0x26   :  { %455 = vmatpush1.msra.mxu1 %v80_v50 }
  0x27   :  { %456 = vmatprep.subr.mxu1 %v1344_v37 }
  0x28   :  { %457 = vmatpush1.msra.mxu1 %v79_v52 }
  0x29   :  { %458 = vmatprep.subr.mxu1 %v1344_v37 }
  0x2a   :  { %459 = vmatpush1.msra.mxu1 %v78_v55 }
  0x2b   :  { %460 = vmatprep.subr.mxu1 %v1344_v37 }
  0x2c   :  { %461 = vmatpush1.msra.mxu1 %v77_v56 }
  0x2d   :  { %462 = vmatprep.subr.mxu1 %v1344_v37 }
  0x2e   :  { %463 = vmatpush1.msra.mxu1 %v76_v59 }
  0x2f   :  { %484 = vmatprep.subr.mxu1 %v1344_v37 }
  0x30   :  { %1044 = vmatpush2.msk.msra.mxu1 %vm428_vm2, %v97_v61 }
  0x31   :  { %486 = vmatprep.subr.mxu1 %v1344_v37 }
  0x32   :  { %487 = vmatpush2.msra.mxu1 %v96_v63 }
  0x33   :  { %488 = vmatprep.subr.mxu1 %v1344_v37 }
  0x74   :  { %v66_v6 = vpop.permute.xlu0 %65  ;;  %v62_v7 = vpop.permute.xlu1 %61 }
  0x75   :  { %v75_v8 = vsel %vm71_vm1, %v1431_v5, %v66_v6  ;;  %v73_v15 = vsel %vm71_vm1, %v1443_v12, %v62_v7  ;;  %v95_v6 = vld [vmem:[%s1983_s3 + $0x98] sm:$0xff] }
  0x76   :  { %1127 = vmatprep.subr.mxu0 %v75_v8  ;;  %489 = vmatpush2.msra.mxu1 %v95_v6 }
  0x77   :  { %1128 = vmatpush3.msra.mxu0 %v75_v8  ;;  %490 = vmatprep.subr.mxu1 %v1344_v37 }
  0x78   :  { %v64_v10 = vpop.permute.xlu0 %63  ;;  %v60_v11 = vpop.permute.xlu1 %59 }
  0x79   :  { %v74_v14 = vsel %vm71_vm1, %v1438_v9, %v64_v10  ;;  %v72_v16 = vsel %vm71_vm1, %v1448_v13, %v60_v11  ;;  %v94_v11 = vld [vmem:[%s1983_s3 + $0x90] sm:$0xff] }
  0x7a   :  { %1129 = vmatprep.subr.mxu0 %v74_v14  ;;  %491 = vmatpush2.msra.mxu1 %v94_v11 }
  0x7b   :  { %1130 = vmatpush3.msra.mxu0 %v74_v14  ;;  %v93_v14 = vld [vmem:[%s1983_s3 + $0x88] sm:$0xff]  ;;  %492 = vmatprep.subr.mxu1 %v1344_v37 }
  0x7c   :  { %1131 = vmatprep.subr.mxu0 %v73_v15  ;;  %493 = vmatpush2.msra.mxu1 %v93_v14 }
  0x7d   :  { %1132 = vmatpush3.msra.mxu0 %v73_v15  ;;  %494 = vmatprep.subr.mxu1 %v1344_v37 }
  0x7e   :  { %1133 = vmatprep.subr.mxu0 %v72_v16 }
  0x7f   :  { %1134 = vmatpush3.msra.mxu0 %v72_v16  ;;  %v92_v16 = vld [vmem:[%s1983_s3 + $0x80] sm:$0xff] }
  0x80   :  { %1136 = vmatmul.mubr.msk.f32.vlgmr.msra.gmra.mxu0 %vm99_vm0, %v1459_v17  ;;  %495 = vmatpush2.msra.mxu1 %v92_v16 }
  0x81   :  { %1138 = vmatprep.mubr.msk.f32.mxu0 %vm99_vm0, %v1464_v18  ;;  %1203 = vmatprep.subr.mxu1 %v1344_v37 }
  0x84   :  { %1139 = vmatmul.mubr.msk.f32.gmra.mxu0 %vm99_vm0, %v1473_v19 }
  0x85   :  { %1141 = vmatprep.mubr.msk.f32.mxu0 %vm99_vm0, %v1478_v20 }
  0x88   :  { %1142 = vmatmul.mubr.msk.f32.gmra.mxu0 %vm99_vm0, %v1487_v21 }
  0x89   :  { %1144 = vmatprep.mubr.msk.f32.mxu0 %vm99_vm0, %v1492_v22 }
  0x8c   :  { %1145 = vmatmul.mubr.msk.f32.gmra.mxu0 %vm99_vm0, %v1501_v23 }
  0x8d   :  { %1147 = vmatprep.mubr.msk.f32.mxu0 %vm99_vm0, %v1506_v24 }
  0x90   :  { %1148 = vmatmul.mubr.msk.f32.gmra.mxu0 %vm99_vm0, %v1515_v25 }
  0x91   :  { %1150 = vmatprep.mubr.msk.f32.mxu0 %vm99_vm0, %v1520_v26 }
  0x94   :  { %1151 = vmatmul.mubr.msk.f32.gmra.mxu0 %vm99_vm0, %v1529_v27 }
  0x95   :  { %1153 = vmatprep.mubr.msk.f32.mxu0 %vm99_vm0, %v1534_v28 }
  0x98   :  { %1154 = vmatmul.mubr.msk.f32.gmra.mxu0 %vm99_vm0, %v1543_v29 }
  0x99   :  { %1156 = vmatprep.mubr.msk.f32.mxu0 %vm99_vm0, %v1548_v30 }
  0x9c   :  { %1157 = vmatmul.mubr.msk.f32.gmra.mxu0 %vm99_vm0, %v1557_v31 }
  0x9d   :  { %1159 = vmatprep.mubr.msk.f32.mxu0 %vm99_vm0, %v1562_v32 }
  0xa0   :  { %1160 = vmatmul.mubr.msk.f32.gmra.mxu0 %vm99_vm0, %v1571_v33 }
  0xa1   :  { %1162 = vmatprep.mubr.msk.f32.mxu0 %vm99_vm0, %v1576_v34 }
  0xa4   :  { %1163 = vmatmul.mubr.msk.f32.gmra.mxu0 %vm99_vm0, %v1585_v35 }
  0xa5   :  { %1173 = vmatprep.mubr.msk.f32.mxu0 %vm99_vm0, %v1420_v4 }
 0x140   :  { %v1628_v46 = vpop.f32.mrf.mxu0 }
 0x142   :  { %v1636_v49 = vpop.f32.mrf.mxu0 }
 0x144   :  { %v1642_v51 = vpop.f32.mrf.mxu0 }
 0x146   :  { %v1648_v53 = vpop.f32.mrf.mxu0 }
 0x148   :  { %v1143_v54 = vpop.f32.mrf.mxu0 }
 0x14a   :  { %v246_v57 = vpop.f32.mrf.mxu0 }
 0x14b   :  { %v1257_v58 = vpack.i.bf16 %v1143_v54, %v246_v57 }
 0x14c   :  { %v1146_v60 = vpop.f32.mrf.mxu0 }
 0x14d   :  { %1258 = vrot.lane.b32.xlu0 %v1257_v58, %s1345_s17 }
 0x14e   :  { %v256_v62 = vpop.f32.mrf.mxu0 }
 0x14f   :  { %v1267_v41 = vpack.i.bf16 %v1146_v60, %v256_v62 }
 0x150   :  { %v1149_v4 = vpop.f32.mrf.mxu0 }
 0x152   :  { %v266_v7 = vpop.f32.mrf.mxu0 }
 0x153   :  { %v1262_v8 = vpack.i.bf16 %v1149_v4, %v266_v7 }
 0x154   :  { %v1152_v10 = vpop.f32.mrf.mxu0 }
 0x155   :  { %1263 = vrot.lane.b32.xlu1 %v1262_v8, %s1346_s25 }
 0x156   :  { %v276_v15 = vpop.f32.mrf.mxu0 }
 0x157   :  { %v1272_v44 = vpack.i.bf16 %v1152_v10, %v276_v15 }
 0x158   :  { %v1155_v36 = vpop.f32.mrf.mxu0 }
 0x159   :  { %363 = vrot.lane.b32.xlu0 %v1155_v36, %s1347_s29 }
 0x15a   :  { %v286_v38 = vpop.f32.mrf.mxu0 }
 0x15c   :  { %v1158_v39 = vpop.f32.mrf.mxu0 }
 0x15d   :  { %361 = vrot.lane.b32.xlu0 %v286_v38, %s1347_s29 }
 0x15e   :  { %v296_v40 = vpop.f32.mrf.mxu0 }
 0x160   :  { %v1161_v42 = vpop.f32.mrf.mxu0 }
 0x161   :  { %1268 = vrot.lane.b32.xlu0 %v1267_v41, %s1345_s17  ;;  %379 = vrot.lane.b32.xlu1 %v1161_v42, %s1348_s30 }
 0x162   :  { %v306_v43 = vpop.f32.mrf.mxu0 }
 0x164   :  { %v1164_v45 = vpop.f32.mrf.mxu0 }
 0x165   :  { %365 = vrot.lane.b32.xlu0 %v296_v40, %s1347_s29  ;;  %377 = vrot.lane.b32.xlu1 %v306_v43, %s1348_s30 }
 0x166   :  { %v316_v47 = vpop.f32.mrf.mxu0 }
 0x169   :  { %367 = vrot.lane.b32.xlu0 %v1158_v39, %s1347_s29  ;;  %1273 = vrot.lane.b32.xlu1 %v1272_v44, %s1346_s25 }
 0x16d   :  { %381 = vrot.lane.b32.xlu1 %v316_v47, %s1348_s30 }
 0x171   :  { %383 = vrot.lane.b32.xlu1 %v1164_v45, %s1348_s30 }
 0x1bf   :  { %v1259_v48 = vpop.permute.xlu0 %1258 }
 0x1c0   :  { %v1260_v55 = vunpack.i.l.bf16 %v1259_v48  ;;  %v1261_v58 = vunpack.i.h.bf16 %v1259_v48 }
 0x1c2   :  { %v390_v62 = vsel %vm389_vm3, %v1636_v49, %v1260_v55  ;;  %v391_v8 = vsel %vm389_vm3, %v1628_v46, %v1261_v58 }
 0x1c7   :  { %v1264_v52 = vpop.permute.xlu1 %1263 }
 0x1c8   :  { %v1265_v57 = vunpack.i.l.bf16 %v1264_v52  ;;  %v1266_v59 = vunpack.i.h.bf16 %v1264_v52 }
 0x1ca   :  { %v395_v4 = vsel %vm394_vm4, %v390_v62, %v1265_v57  ;;  %v396_v11 = vsel %vm394_vm4, %v391_v8, %v1266_v59 }
 0x1cb   :  { %v364_v50 = vpop.permute.xlu0 %363 }
 0x1cc   :  { %v401_v36 = vsel %vm399_vm7, %v396_v11, %v364_v50 }
 0x1cf   :  { %v362_v54 = vpop.permute.xlu0 %361 }
 0x1d0   :  { %v400_v7 = vsel %vm399_vm7, %v395_v4, %v362_v54 }
 0x1d3   :  { %v380_v56 = vpop.permute.xlu1 %379  ;;  %v1269_v60 = vpop.permute.xlu0 %1268 }
 0x1d4   :  { %v1270_v6 = vunpack.i.l.bf16 %v1269_v60  ;;  %v406_v10 = vsel %vm404_vm6, %v364_v50, %v380_v56  ;;  %v1271_v15 = vunpack.i.h.bf16 %v1269_v60  ;;  %v1043_v50 = vld [vmem:[%s1984_s4] ss:$0 sm:$0xff] }
 0x1d6   :  { %v392_v38 = vsel %vm389_vm3, %v1648_v53, %v1270_v6  ;;  %v393_v43 = vsel %vm389_vm3, %v1642_v51, %v1271_v15 }
 0x1d7   :  { %v378_v61 = vpop.permute.xlu1 %377  ;;  %v366_v16 = vpop.permute.xlu0 %365 }
 0x1d8   :  { %v405_v63 = vsel %vm404_vm6, %v362_v54, %v378_v61 }
 0x1d9   :  { %1045 = vmatprep.mubr.msk.f32.mxu1 %vm415_vm5, %v405_v63 }
 0x1da   :  { %497 = vmatmul.mubr.f32.vlgmr.msra.gmra.mxu1 %v400_v7 }
 0x1db   :  { %1046 = vmatprep.mubr.msk.f32.mxu1 %vm415_vm5, %v406_v10  ;;  %v1274_v49 = vpop.permute.xlu1 %1273  ;;  %v368_v45 = vpop.permute.xlu0 %367 }
 0x1dc   :  { %v1275_v14 = vunpack.i.l.bf16 %v1274_v49  ;;  %v1276_v39 = vunpack.i.h.bf16 %v1274_v49 }
 0x1de   :  { %502 = vmatmul.mubr.f32.gmra.mxu1 %v401_v36  ;;  %v397_v46 = vsel %vm394_vm4, %v392_v38, %v1275_v14  ;;  %v398_v44 = vsel %vm394_vm4, %v393_v43, %v1276_v39 }
 0x1df   :  { %v382_v40 = vpop.permute.xlu1 %381  ;;  %v402_v42 = vsel %vm399_vm7, %v397_v46, %v366_v16  ;;  %v403_v48 = vsel %vm399_vm7, %v398_v44, %v368_v45 }
 0x1e0   :  { %v407_v41 = vsel %vm404_vm6, %v366_v16, %v382_v40 }
 0x1e1   :  { %1047 = vmatprep.mubr.msk.f32.mxu1 %vm415_vm5, %v407_v41 }
 0x1e2   :  { %507 = vmatmul.mubr.f32.gmra.mxu1 %v402_v42 }
 0x1e3   :  { %v384_v47 = vpop.permute.xlu1 %383 }
 0x1e4   :  { %v408_v53 = vsel %vm404_vm6, %v368_v45, %v384_v47 }
 0x1e5   :  { %1048 = vmatprep.mubr.msk.f32.mxu1 %vm415_vm5, %v408_v53 }
 0x1e6   :  { %512 = vmatmul.mubr.f32.gmra.mxu1 %v403_v48 }
 0x29a   :  { %v498_v52 = vpop.f32.mrf.mxu1 }
 0x29b   :  { %v499_v55 = vadd.f32 %v1043_v50, %v498_v52 }
 0x29c   :  { %v500_v54 = vpop.f32.mrf.mxu1 }
 0x29d   :  { %v1049_v57 = vmul.f32 -1.442695, %v499_v55 }
 0x29e   :  { %v503_v51 = vpop.f32.mrf.mxu1 }
 0x29f   :  { %v504_v58 = vadd.f32 %v1043_v50, %v503_v51  ;;  %1297 = vpow2.f32 %v1049_v57 }
 0x2a0   :  { %v505_v56 = vpop.f32.mrf.mxu1 }
 0x2a1   :  { %v1050_v62 = vmul.f32 -1.442695, %v504_v58 }
 0x2a2   :  { %v508_v59 = vpop.f32.mrf.mxu1 }
 0x2a3   :  { %v509_v60 = vadd.f32 %v1043_v50, %v508_v59  ;;  %v585_v59 = vld [vmem:[%s1985_s5 + $0xa0] sm:$0xff] }
 0x2a4   :  { %v510_v61 = vpop.f32.mrf.mxu1 }
 0x2a5   :  { %v1051_v63 = vmul.f32 -1.442695, %v509_v60  ;;  %v584_v61 = vld [vmem:[%s1985_s5 + $0x98] sm:$0xff] }
 0x2a6   :  { %v513_v4 = vpop.f32.mrf.mxu1 }
 0x2a7   :  { %1299 = vpow2.f32 %v1051_v63  ;;  %v514_v6 = vadd.f32 %v1043_v50, %v513_v4  ;;  %v583_v63 = vld [vmem:[%s1985_s5 + $0x90] sm:$0xff] }
 0x2a8   :  { %v515_v7 = vpop.f32.mrf.mxu1  ;;  %1301 = vpow2.f32 %v1050_v62 }
 0x2a9   :  { %v1052_v8 = vmul.f32 -1.442695, %v514_v6  ;;  %v582_v6 = vld [vmem:[%s1985_s5 + $0x88] sm:$0xff] }
 0x2ab   :  { %1303 = vpow2.f32 %v1052_v8 }
 0x2ac   :  { %v1298_v10 = vpop.eup %1297 }
 0x2ad   :  { %v529_v49 = vadd.f32 1.0, %v1298_v10 }
 0x2b4   :  { %v1300_v11 = vpop.eup %1299 }
 0x2b5   :  { %v531_v14 = vadd.f32 1.0, %v1300_v11  ;;  %v1302_v15 = vpop.eup %1301  ;;  %v581_v11 = vld [vmem:[%s1985_s5 + $0x80] sm:$0xff] }
 0x2b6   :  { %v530_v36 = vadd.f32 1.0, %v1302_v15 }
 0x2b7   :  { %1305 = vrcp.f32 %v531_v14 }
 0x2b8   :  { %v1304_v16 = vpop.eup %1303  ;;  %1307 = vrcp.f32 %v529_v49 }
 0x2b9   :  { %v532_v38 = vadd.f32 1.0, %v1304_v16 }
 0x2bb   :  { %1309 = vrcp.f32 %v532_v38 }
 0x2bc   :  { %1311 = vrcp.f32 %v530_v36 }
 0x2c4   :  { %v1728_v39 = vpop.eup %1305 }
 0x2c5   :  { %v543_v46 = vmul.f32 %v1728_v39, %v1410_v2  ;;  %v1732_v40 = vpop.eup %1307 }
 0x2c6   :  { %v541_v42 = vmul.f32 %v1732_v40, %v1415_v3 }
 0x2c7   :  { %553 = vrot.lane.b32.xlu1 %v543_v46, %s1343_s28 }
 0x2c8   :  { %v1735_v41 = vpop.eup %1309 }
 0x2c9   :  { %v544_v43 = vmul.f32 %v1735_v41, %v1396_v0  ;;  %v1741_v44 = vpop.eup %1311 }
 0x2ca   :  { %v542_v45 = vmul.f32 %v1741_v44, %v1401_v1 }
 0x2cb   :  { %549 = vrot.lane.b32.xlu1 %v541_v42, %s1343_s28  ;;  %555 = vrot.lane.b32.xlu0 %v544_v43, %s1343_s28 }
 0x2cf   :  { %551 = vrot.lane.b32.xlu0 %v542_v45, %s1343_s28 }
 0x339   :  { %v554_v47 = vpop.permute.xlu1 %553 }
 0x33a   :  { %v563_v50 = vsel %vm71_vm1, %v1438_v9, %v554_v47  ;;  %v579_v9 = vld [vmem:[%s1985_s5 + $0x70] sm:$0xff] }
 0x33d   :  { %v556_v53 = vpop.permute.xlu0 %555  ;;  %v550_v52 = vpop.permute.xlu1 %549 }
 0x33e   :  { %v564_v48 = vsel %vm71_vm1, %v1431_v5, %v556_v53  ;;  %v561_v51 = vsel %vm71_vm1, %v1448_v13, %v550_v52  ;;  %v580_v5 = vld [vmem:[%s1985_s5 + $0x78] sm:$0xff]  ;;  %v577_v13 = vld [vmem:[%s1985_s5 + $0x60] sm:$0xff] }
 0x33f   :  { %1165 = vmatprep.subr.mxu0 %v564_v48  ;;  %1225 = vmatpush1.msra.mxu1 %v580_v5 }
 0x340   :  { %1166 = vmatpush3.msra.mxu0 %v564_v48  ;;  %1204 = vmatprep.subr.mxu1 %v1344_v37 }
 0x341   :  { %v552_v54 = vpop.permute.xlu0 %551  ;;  %1167 = vmatprep.subr.mxu0 %v563_v50  ;;  %1226 = vmatpush1.msra.mxu1 %v579_v9 }
 0x342   :  { %1168 = vmatpush3.msra.mxu0 %v563_v50  ;;  %v562_v55 = vsel %vm71_vm1, %v1443_v12, %v552_v54  ;;  %v578_v12 = vld [vmem:[%s1985_s5 + $0x68] sm:$0xff]  ;;  %1205 = vmatprep.subr.mxu1 %v1344_v37 }
 0x343   :  { %1169 = vmatprep.subr.mxu0 %v562_v55  ;;  %1227 = vmatpush1.msra.mxu1 %v578_v12 }
 0x344   :  { %1170 = vmatpush3.msra.mxu0 %v562_v55  ;;  %1206 = vmatprep.subr.mxu1 %v1344_v37 }
 0x345   :  { %1171 = vmatprep.subr.mxu0 %v561_v51  ;;  %1228 = vmatpush1.msra.mxu1 %v577_v13 }
 0x346   :  { %1172 = vmatpush3.msra.mxu0 %v561_v51  ;;  %1207 = vmatprep.subr.mxu1 %v1344_v37 }
 0x347   :  { %1174 = vmatmul.mubr.msk.f32.vlgmr.msra.gmra.mxu0 %vm99_vm0, %v1459_v17  ;;  %854 = vmatprep.subr.mxu0 %v1344_v37  ;;  %v576_v17 = vld [vmem:[%s1985_s5 + $0x58] sm:$0xff] }
 0x348   :  { %1176 = vmatprep.mubr.msk.f32.mxu0 %vm99_vm0, %v1464_v18  ;;  %855 = vmatpush1.msra.mxu0 %v580_v5  ;;  %v575_v18 = vld [vmem:[%s1985_s5 + $0x50] sm:$0xff] }
 0x349   :  { %856 = vmatprep.subr.mxu0 %v1344_v37  ;;  %1229 = vmatpush1.msra.mxu1 %v576_v17 }
 0x34a   :  { %857 = vmatpush1.msra.mxu0 %v579_v9  ;;  %1208 = vmatprep.subr.mxu1 %v1344_v37 }
 0x34b   :  { %1177 = vmatmul.mubr.msk.f32.gmra.mxu0 %vm99_vm0, %v1473_v19  ;;  %858 = vmatprep.subr.mxu0 %v1344_v37  ;;  %v574_v19 = vld [vmem:[%s1985_s5 + $0x48] sm:$0xff] }
 0x34c   :  { %1179 = vmatprep.mubr.msk.f32.mxu0 %vm99_vm0, %v1478_v20  ;;  %859 = vmatpush1.msra.mxu0 %v578_v12  ;;  %v573_v20 = vld [vmem:[%s1985_s5 + $0x40] sm:$0xff] }
 0x34d   :  { %860 = vmatprep.subr.mxu0 %v1344_v37  ;;  %1230 = vmatpush1.msra.mxu1 %v575_v18 }
 0x34e   :  { %861 = vmatpush1.msra.mxu0 %v577_v13  ;;  %1209 = vmatprep.subr.mxu1 %v1344_v37 }
 0x34f   :  { %1180 = vmatmul.mubr.msk.f32.gmra.mxu0 %vm99_vm0, %v1487_v21  ;;  %862 = vmatprep.subr.mxu0 %v1344_v37  ;;  %v572_v21 = vld [vmem:[%s1985_s5 + $0x38] sm:$0xff] }
 0x350   :  { %1182 = vmatprep.mubr.msk.f32.mxu0 %vm99_vm0, %v1492_v22  ;;  %863 = vmatpush1.msra.mxu0 %v576_v17  ;;  %v571_v22 = vld [vmem:[%s1985_s5 + $0x30] sm:$0xff] }
 0x351   :  { %864 = vmatprep.subr.mxu0 %v1344_v37  ;;  %1231 = vmatpush1.msra.mxu1 %v574_v19 }
 0x352   :  { %865 = vmatpush1.msra.mxu0 %v575_v18  ;;  %1210 = vmatprep.subr.mxu1 %v1344_v37 }
 0x353   :  { %1183 = vmatmul.mubr.msk.f32.gmra.mxu0 %vm99_vm0, %v1501_v23  ;;  %866 = vmatprep.subr.mxu0 %v1344_v37  ;;  %v570_v23 = vld [vmem:[%s1985_s5 + $0x28] sm:$0xff] }
 0x354   :  { %1185 = vmatprep.mubr.msk.f32.mxu0 %vm99_vm0, %v1506_v24  ;;  %867 = vmatpush1.msra.mxu0 %v574_v19 }
 0x355   :  { %868 = vmatprep.subr.mxu0 %v1344_v37  ;;  %1232 = vmatpush1.msra.mxu1 %v573_v20 }
 0x356   :  { %869 = vmatpush1.msra.mxu0 %v573_v20  ;;  %1211 = vmatprep.subr.mxu1 %v1344_v37 }
 0x357   :  { %1186 = vmatmul.mubr.msk.f32.gmra.mxu0 %vm99_vm0, %v1515_v25  ;;  %870 = vmatprep.subr.mxu0 %v1344_v37 }
 0x358   :  { %1188 = vmatprep.mubr.msk.f32.mxu0 %vm99_vm0, %v1520_v26  ;;  %1233 = vmatpush1.msra.mxu1 %v572_v21  ;;  %v569_v26 = vld [vmem:[%s1985_s5 + $0x20] sm:$0xff] }
 0x359   :  { %871 = vmatpush1.msra.mxu0 %v572_v21  ;;  %1212 = vmatprep.subr.mxu1 %v1344_v37 }
 0x35a   :  { %872 = vmatprep.subr.mxu0 %v1344_v37  ;;  %1234 = vmatpush1.msra.mxu1 %v571_v22 }
 0x35b   :  { %1189 = vmatmul.mubr.msk.f32.gmra.mxu0 %vm99_vm0, %v1529_v27  ;;  %1213 = vmatprep.subr.mxu1 %v1344_v37  ;;  %v568_v27 = vld [vmem:[%s1985_s5 + $0x18] sm:$0xff] }
 0x35c   :  { %1191 = vmatprep.mubr.msk.f32.mxu0 %vm99_vm0, %v1534_v28  ;;  %873 = vmatpush1.msra.mxu0 %v571_v22 }
 0x35d   :  { %874 = vmatprep.subr.mxu0 %v1344_v37  ;;  %1235 = vmatpush1.msra.mxu1 %v570_v23 }
 0x35e   :  { %875 = vmatpush1.msra.mxu0 %v570_v23  ;;  %1214 = vmatprep.subr.mxu1 %v1344_v37 }
 0x35f   :  { %1192 = vmatmul.mubr.msk.f32.gmra.mxu0 %vm99_vm0, %v1543_v29  ;;  %876 = vmatprep.subr.mxu0 %v1344_v37 }
 0x360   :  { %1194 = vmatprep.mubr.msk.f32.mxu0 %vm99_vm0, %v1548_v30  ;;  %1236 = vmatpush1.msra.mxu1 %v569_v26  ;;  %v567_v30 = vld [vmem:[%s1985_s5 + $0x10] sm:$0xff] }
 0x361   :  { %877 = vmatpush1.msra.mxu0 %v569_v26  ;;  %1215 = vmatprep.subr.mxu1 %v1344_v37 }
 0x362   :  { %878 = vmatprep.subr.mxu0 %v1344_v37  ;;  %1237 = vmatpush1.msra.mxu1 %v568_v27 }
 0x363   :  { %1195 = vmatmul.mubr.msk.f32.gmra.mxu0 %vm99_vm0, %v1557_v31  ;;  %1216 = vmatprep.subr.mxu1 %v1344_v37 }
 0x364   :  { %1197 = vmatprep.mubr.msk.f32.mxu0 %vm99_vm0, %v1562_v32  ;;  %879 = vmatpush1.msra.mxu0 %v568_v27  ;;  %v566_v32 = vld [vmem:[%s1985_s5 + $0x8] sm:$0xff] }
 0x365   :  { %880 = vmatprep.subr.mxu0 %v1344_v37  ;;  %1238 = vmatpush1.msra.mxu1 %v567_v30 }
 0x366   :  { %881 = vmatpush1.msra.mxu0 %v567_v30  ;;  %1217 = vmatprep.subr.mxu1 %v1344_v37 }
 0x367   :  { %1198 = vmatmul.mubr.msk.f32.gmra.mxu0 %vm99_vm0, %v1571_v33  ;;  %882 = vmatprep.subr.mxu0 %v1344_v37 }
 0x368   :  { %1200 = vmatprep.mubr.msk.f32.mxu0 %vm99_vm0, %v1576_v34  ;;  %1239 = vmatpush1.msra.mxu1 %v566_v32  ;;  %v565_v34 = vld [vmem:[%s1985_s5] sm:$0xff] }
 0x369   :  { %883 = vmatpush1.msra.mxu0 %v566_v32  ;;  %1218 = vmatprep.subr.mxu1 %v1344_v37 }
 0x36a   :  { %884 = vmatprep.subr.mxu0 %v1344_v37  ;;  %1240 = vmatpush1.msra.mxu1 %v565_v34 }
 0x36b   :  { %1201 = vmatmul.mubr.msk.f32.gmra.mxu0 %vm99_vm0, %v1585_v35  ;;  %v586_v35 = vld [vmem:[%s1985_s5 + $0xa8] sm:$0x3]  ;;  %1219 = vmatprep.subr.mxu1 %v1344_v37  ;;  %s1349_s5 = smov 32  }
 0x36c   :  { %885 = vmatpush1.msra.mxu0 %v565_v34  ;;  %1241 = vmatpush2.msk.msra.mxu1 %vm428_vm2, %v586_v35 }
 0x36d   :  { %906 = vmatprep.subr.mxu0 %v1344_v37  ;;  %1220 = vmatprep.subr.mxu1 %v1344_v37 }
 0x36e   :  { %1074 = vmatpush2.msk.msra.mxu0 %vm428_vm2, %v586_v35  ;;  %1242 = vmatpush2.msra.mxu1 %v585_v59 }
 0x36f   :  { %908 = vmatprep.subr.mxu0 %v1344_v37  ;;  %1221 = vmatprep.subr.mxu1 %v1344_v37 }
 0x370   :  { %909 = vmatpush2.msra.mxu0 %v585_v59  ;;  %1243 = vmatpush2.msra.mxu1 %v584_v61 }
 0x371   :  { %910 = vmatprep.subr.mxu0 %v1344_v37  ;;  %1222 = vmatprep.subr.mxu1 %v1344_v37 }
 0x372   :  { %911 = vmatpush2.msra.mxu0 %v584_v61  ;;  %1244 = vmatpush2.msra.mxu1 %v583_v63 }
 0x373   :  { %912 = vmatprep.subr.mxu0 %v1344_v37  ;;  %1223 = vmatprep.subr.mxu1 %v1344_v37 }
 0x374   :  { %913 = vmatpush2.msra.mxu0 %v583_v63  ;;  %1245 = vmatpush2.msra.mxu1 %v582_v6 }
 0x375   :  { %914 = vmatprep.subr.mxu0 %v1344_v37  ;;  %1224 = vmatprep.subr.mxu1 %v1344_v37 }
 0x376   :  { %915 = vmatpush2.msra.mxu0 %v582_v6  ;;  %1246 = vmatpush2.msra.mxu1 %v581_v11 }
 0x377   :  { %916 = vmatprep.subr.mxu0 %v1344_v37 }
 0x378   :  { %917 = vmatpush2.msra.mxu0 %v581_v11 }
 0x407   :  { %v1850_v24 = vpop.f32.mrf.mxu0 }
 0x409   :  { %v1852_v25 = vpop.f32.mrf.mxu0 }
 0x40b   :  { %v1860_v28 = vpop.f32.mrf.mxu0 }
 0x40d   :  { %v1864_v29 = vpop.f32.mrf.mxu0 }
 0x40f   :  { %v1181_v31 = vpop.f32.mrf.mxu0 }
 0x411   :  { %v674_v33 = vpop.f32.mrf.mxu0 }
 0x413   :  { %v1184_v56 = vpop.f32.mrf.mxu0 }
 0x414   :  { %v1277_v57 = vpack.i.bf16 %v1184_v56, %v674_v33  ;;  %v1073_v56 = vld [vmem:[%s1986_s6] ss:$0 sm:$0xff]  ;;  %s1350_s6 = smov 96  }
 0x415   :  { %v684_v58 = vpop.f32.mrf.mxu0 }
 0x416   :  { %1278 = vrot.lane.b32.xlu0 %v1277_v57, %s1345_s17  ;;  %v1282_v62 = vpack.i.bf16 %v684_v58, %v1181_v31 }
 0x417   :  { %v1187_v60 = vpop.f32.mrf.mxu0 }
 0x419   :  { %v694_v4 = vpop.f32.mrf.mxu0 }
 0x41a   :  { %1283 = vrot.lane.b32.xlu0 %v1282_v62, %s1345_s17 }
 0x41b   :  { %v1190_v7 = vpop.f32.mrf.mxu0 }
 0x41c   :  { %v1287_v8 = vpack.i.bf16 %v1190_v7, %v694_v4 }
 0x41d   :  { %v704_v10 = vpop.f32.mrf.mxu0 }
 0x41e   :  { %1288 = vrot.lane.b32.xlu1 %v1287_v8, %s1346_s25  ;;  %v1292_v14 = vpack.i.bf16 %v704_v10, %v1187_v60 }
 0x41f   :  { %v1193_v49 = vpop.f32.mrf.mxu0 }
 0x420   :  { %791 = vrot.lane.b32.xlu0 %v1193_v49, %s1347_s29 }
 0x421   :  { %v714_v15 = vpop.f32.mrf.mxu0 }
 0x422   :  { %1293 = vrot.lane.b32.xlu1 %v1292_v14, %s1346_s25 }
 0x423   :  { %v1196_v16 = vpop.f32.mrf.mxu0 }
 0x424   :  { %789 = vrot.lane.b32.xlu0 %v714_v15, %s1347_s29 }
 0x425   :  { %v724_v36 = vpop.f32.mrf.mxu0 }
 0x426   :  { %795 = vrot.lane.b32.xlu1 %v1196_v16, %s1347_s29 }
 0x427   :  { %v1199_v38 = vpop.f32.mrf.mxu0 }
 0x428   :  { %793 = vrot.lane.b32.xlu0 %v724_v36, %s1347_s29 }
 0x429   :  { %v734_v46 = vpop.f32.mrf.mxu0 }
 0x42a   :  { %807 = vrot.lane.b32.xlu1 %v1199_v38, %s1348_s30 }
 0x42b   :  { %v1202_v37 = vpop.f32.mrf.mxu0 }
 0x42c   :  { %805 = vrot.lane.b32.xlu0 %v734_v46, %s1348_s30  ;;  %v960_v46 = vsub.f32 1.0, %v1741_v44 }
 0x42d   :  { %v744_v42 = vpop.f32.mrf.mxu0 }
 0x42e   :  { %809 = vrot.lane.b32.xlu1 %v744_v42, %s1348_s30 }
 0x430   :  { %943 = vrot.lane.b32.xlu0 %v1415_v3, %s1349_s5 }
 0x432   :  { %811 = vrot.lane.b32.xlu1 %v1202_v37, %s1348_s30 }
 0x434   :  { %947 = vrot.lane.b32.xlu0 %v1410_v2, %s1349_s5 }
 0x436   :  { %945 = vrot.lane.b32.xlu1 %v1401_v1, %s1349_s5 }
 0x43a   :  { %949 = vrot.lane.b32.xlu1 %v1396_v0, %s1349_s5 }
 0x488   :  { %v1279_v43 = vpop.permute.xlu0 %1278 }
 0x489   :  { %v1280_v55 = vunpack.i.l.bf16 %v1279_v43  ;;  %v1281_v22 = vunpack.i.h.bf16 %v1279_v43 }
 0x48b   :  { %v817_v17 = vsel %vm389_vm3, %v1852_v25, %v1280_v55  ;;  %v820_v33 = vsel %vm389_vm3, %v1860_v28, %v1281_v22 }
 0x48c   :  { %v1284_v45 = vpop.permute.xlu0 %1283 }
 0x48d   :  { %v1285_v50 = vunpack.i.l.bf16 %v1284_v45  ;;  %v1286_v9 = vunpack.i.h.bf16 %v1284_v45  ;;  %v959_v45 = vsub.f32 1.0, %v1732_v40 }
 0x48f   :  { %v818_v51 = vsel %vm389_vm3, %v1850_v24, %v1285_v50  ;;  %v819_v26 = vsel %vm389_vm3, %v1864_v29, %v1286_v9 }
 0x490   :  { %v1289_v47 = vpop.permute.xlu1 %1288 }
 0x491   :  { %v1290_v5 = vunpack.i.l.bf16 %v1289_v47  ;;  %v1291_v25 = vunpack.i.h.bf16 %v1289_v47 }
 0x492   :  { %v792_v53 = vpop.permute.xlu0 %791 }
 0x493   :  { %v821_v20 = vsel %vm394_vm4, %v817_v17, %v1290_v5  ;;  %v824_v35 = vsel %vm394_vm4, %v820_v33, %v1291_v25 }
 0x494   :  { %v1294_v48 = vpop.permute.xlu1 %1293 }
 0x495   :  { %v1295_v54 = vunpack.i.l.bf16 %v1294_v48  ;;  %v1296_v0 = vunpack.i.h.bf16 %v1294_v48 }
 0x496   :  { %v790_v52 = vpop.permute.xlu0 %789 }
 0x497   :  { %v822_v1 = vsel %vm394_vm4, %v818_v51, %v1295_v54  ;;  %v825_v23 = vsel %vm399_vm7, %v821_v20, %v790_v52  ;;  %v823_v30 = vsel %vm394_vm4, %v819_v26, %v1296_v0  ;;  %v961_v54 = vsub.f32 1.0, %v1728_v39 }
 0x498   :  { %v796_v3 = vpop.permute.xlu1 %795  ;;  %v826_v19 = vsel %vm399_vm7, %v822_v1, %v792_v53 }
 0x499   :  { %v828_v29 = vsel %vm399_vm7, %v824_v35, %v796_v3 }
 0x49a   :  { %v794_v2 = vpop.permute.xlu0 %793 }
 0x49b   :  { %v827_v31 = vsel %vm399_vm7, %v823_v30, %v794_v2 }
 0x49c   :  { %v808_v12 = vpop.permute.xlu1 %807 }
 0x49d   :  { %v830_v13 = vsel %vm404_vm6, %v792_v53, %v808_v12 }
 0x49e   :  { %1076 = vmatprep.mubr.msk.f32.mxu1 %vm415_vm5, %v830_v13  ;;  %v806_v18 = vpop.permute.xlu0 %805 }
 0x49f   :  { %v829_v21 = vsel %vm404_vm6, %v790_v52, %v806_v18  ;;  %924 = vmatmul.mubr.f32.vlgmr.msra.gmra.mxu1 %v826_v19 }
 0x4a0   :  { %1075 = vmatprep.mubr.msk.f32.mxu0 %vm415_vm5, %v829_v21  ;;  %v810_v24 = vpop.permute.xlu1 %809 }
 0x4a1   :  { %v831_v27 = vsel %vm404_vm6, %v794_v2, %v810_v24  ;;  %919 = vmatmul.mubr.f32.vlgmr.msra.gmra.mxu0 %v825_v23 }
 0x4a2   :  { %1077 = vmatprep.mubr.msk.f32.mxu1 %vm415_vm5, %v831_v27  ;;  %v944_v16 = vpop.permute.xlu0 %943 }
 0x4a3   :  { %929 = vmatmul.mubr.f32.gmra.mxu1 %v827_v31  ;;  %v955_v53 = vmul.f32 %v1732_v40, %v944_v16 }
 0x4a4   :  { %v812_v32 = vpop.permute.xlu1 %811 }
 0x4a5   :  { %v832_v34 = vsel %vm404_vm6, %v796_v3, %v812_v32 }
 0x4a6   :  { %1078 = vmatprep.mubr.msk.f32.mxu1 %vm415_vm5, %v832_v34  ;;  %v948_v38 = vpop.permute.xlu0 %947 }
 0x4a7   :  { %934 = vmatmul.mubr.f32.gmra.mxu1 %v828_v29  ;;  %v957_v55 = vmul.f32 %v1728_v39, %v948_v38 }
 0x4a8   :  { %v946_v15 = vpop.permute.xlu1 %945 }
 0x4a9   :  { %v956_v42 = vmul.f32 %v1741_v44, %v946_v15  ;;  %v962_v44 = vsub.f32 1.0, %v1735_v41 }
 0x4ac   :  { %v950_v36 = vpop.permute.xlu1 %949 }
 0x4ad   :  { %v958_v5 = vmul.f32 %v1735_v41, %v950_v36 }
 0x55f   :  { %v925_v57 = vpop.f32.mrf.mxu1 }
 0x560   :  { %v926_v58 = vadd.f32 %v1073_v56, %v925_v57 }
 0x561   :  { %v920_v59 = vpop.f32.mrf.mxu0  ;;  %v927_v60 = vpop.f32.mrf.mxu1 }
 0x562   :  { %1313 = vtanh.f32 %v926_v58  ;;  %v921_v61 = vadd.f32 %v1073_v56, %v920_v59 }
 0x563   :  { %v922_v28 = vpop.f32.mrf.mxu0  ;;  %v930_v62 = vpop.f32.mrf.mxu1 }
 0x564   :  { %1315 = vtanh.f32 %v921_v61  ;;  %v931_v63 = vadd.f32 %v1073_v56, %v930_v62 }
 0x565   :  { %v932_v4 = vpop.f32.mrf.mxu1 }
 0x566   :  { %1317 = vtanh.f32 %v931_v63 }
 0x567   :  { %v935_v6 = vpop.f32.mrf.mxu1 }
 0x568   :  { %v936_v7 = vadd.f32 %v1073_v56, %v935_v6 }
 0x569   :  { %v937_v8 = vpop.f32.mrf.mxu1 }
 0x56a   :  { %1319 = vtanh.f32 %v936_v7 }
 0x56f   :  { %v1314_v10 = vpop.eup %1313 }
 0x570   :  { %969 = vrot.lane.b32.xlu1 %v1314_v10, %s1349_s5 }
 0x571   :  { %v1316_v11 = vpop.eup %1315 }
 0x572   :  { %967 = vrot.lane.b32.xlu0 %v1316_v11, %s1349_s5 }
 0x573   :  { %v1318_v49 = vpop.eup %1317 }
 0x576   :  { %971 = vrot.lane.b32.xlu0 %v1318_v49, %s1349_s5 }
 0x577   :  { %v1320_v14 = vpop.eup %1319 }
 0x578   :  { %973 = vrot.lane.b32.xlu1 %v1320_v14, %s1349_s5 }
 0x5e2   :  { %v970_v37 = vpop.permute.xlu1 %969 }
 0x5e3   :  { %v980_v43 = vmul.f32 %v970_v37, %v960_v46 }
 0x5e4   :  { %v968_v47 = vpop.permute.xlu0 %967 }
 0x5e5   :  { %v984_v48 = vadd.f32 %v980_v43, %v956_v42  ;;  %v979_v50 = vmul.f32 %v968_v47, %v959_v45 }
 0x5e7   :  { %v983_v52 = vadd.f32 %v979_v50, %v955_v53  ;;  %993 = vrot.lane.b32.xlu1 %v984_v48, %s1350_s6 }
 0x5e8   :  { %v972_v3 = vpop.permute.xlu0 %971 }
 0x5e9   :  { %v981_v51 = vmul.f32 %v972_v3, %v961_v54  ;;  %991 = vrot.lane.b32.xlu0 %v983_v52, %s1350_s6 }
 0x5ea   :  { %v974_v2 = vpop.permute.xlu1 %973 }
 0x5eb   :  { %v985_v1 = vadd.f32 %v981_v51, %v957_v55  ;;  %v982_v9 = vmul.f32 %v974_v2, %v962_v44 }
 0x5ed   :  { %v986_v40 = vadd.f32 %v982_v9, %v958_v5  ;;  %995 = vrot.lane.b32.xlu0 %v985_v1, %s1350_s6 }
 0x5ef   :  { %997 = vrot.lane.b32.xlu1 %v986_v40, %s1350_s6 }
 0x659   :  { %v994_v12 = vpop.permute.xlu1 %993 }
 0x65a   :  { %1004 = vst.msk [vmem:[#allocation2 + $0x8] sm:$0xff] %vm99_vm0, %v994_v12 }
 0x65b   :  { %v992_v0 = vpop.permute.xlu0 %991 }
 0x65c   :  { %1003 = vst.msk [vmem:[#allocation2] sm:$0xff] %vm99_vm0, %v992_v0 }
 0x65f   :  { %v996_v39 = vpop.permute.xlu0 %995 }
 0x660   :  { %1005 = vst.msk [vmem:[#allocation2 + $0x10] sm:$0xff] %vm99_vm0, %v996_v39 }
 0x661   :  { %v998_v13 = vpop.permute.xlu1 %997 }
 0x662   :  { %1006 = vst.msk [vmem:[#allocation2 + $0x18] sm:$0xff] %vm99_vm0, %v998_v13 }
 0x663   :  { %1332 = shalt.err (!%p1329_p4)
}
 0x664   :  { %s1352_s3 = smov 128  }
 0x665   :  { %1018 = dma.vmem_to_hbm [thread:$0]  %s1013_s26, 512, %s1987_s7, [#allocation3], %s1352_s3, %s1352_s3, %s1348_s30  }
 0x666   :  { %1341 = dma.done.wait [#allocation3], 512  }
 0x667   :  { %1342 = vsyncadd [#allocation3], 4294966784 }
 0x668   :  { %1022 = vsyncpa [#allocation3], 1 }

</bundles_post_ra>
